<compile_context>
chip_gen: v7x
topology: tpu7x:2x2x1
jax: 0.10.0
libtpu: 0.0.40
codegen_flags: <defaults>
</compile_context>

<pallas_src>
import functools

import jax
import jax.numpy as jnp
from jax.experimental import pallas as pl
from jax.experimental.pallas import tpu as pltpu

_LANE = 128


def _round_up(n: int, m: int) -> int:
    return ((n + m - 1) // m) * m


def _lif_kernel(x_ref, v_ref, spikes_ref, v_out_ref, *, threshold, decay, reset_voltage):
    # Leak + integrate, threshold, reset — single fused elementwise pass.
    v = decay * v_ref[...] + x_ref[...]
    fired = v >= threshold
    spikes_ref[...] = fired.astype(spikes_ref.dtype)
    v_out_ref[...] = jnp.where(fired, jnp.asarray(reset_voltage, dtype=v.dtype), v)


def _device_config():
    """Per-generation tiling / VMEM budget, derived from physical VMEM size."""
    try:
        info = pltpu.get_tpu_info()
        vmem_bytes = int(getattr(info, "vmem_capacity_bytes", 64 * 1024 * 1024))
    except Exception:
        vmem_bytes = 64 * 1024 * 1024  # conservative default (v7x per-TC size)

    if vmem_bytes >= 96 * 1024 * 1024:
        # v5e / v6e: 128 MiB VMEM, single TensorCore -> biggest tiles win.
        return {
            "max_block_bytes": 4 * 1024 * 1024,   # 4 arrays x 2 bufs = 32 MiB
            "vmem_limit_bytes": 64 * 1024 * 1024,
            "min_grid_steps": 1,
        }
    # v7x: 64 MiB per-TC VMEM, 2 TensorCores -> keep >= 4 parallel grid steps
    # so the "parallel" axis can be sharded across both cores.
    return {
        "max_block_bytes": 2 * 1024 * 1024,       # 4 arrays x 2 bufs = 16 MiB
        "vmem_limit_bytes": 32 * 1024 * 1024,
        "min_grid_steps": 4,
    }


@functools.partial(jax.jit, static_argnames=("threshold", "decay", "reset_voltage"))
def lif_neuron_forward(x, membrane_potential, threshold=1.0, decay=0.9, reset_voltage=0.0):
    """Pallas implementation of LIFNeuron.forward.

    x, membrane_potential: float arrays of identical shape (any shape).
    Returns (spikes, new_membrane_potential) with the same shape/dtype.
    threshold/decay/reset_voltage are compile-time constants (as in the module).
    """
    assert x.shape == membrane_potential.shape
    orig_shape = x.shape
    dtype = x.dtype
    itemsize = jnp.dtype(dtype).itemsize
    sublane = {4: 8, 2: 16, 1: 32}.get(itemsize, 8)

    cfg = _device_config()

    total = x.size
    rows = pl.cdiv(total, _LANE)
    padded_total = rows * _LANE
    needs_pad = padded_total != total  # only when total is not a multiple of 128

    x_flat = jnp.ravel(x)
    v_flat = jnp.ravel(membrane_potential)
    if needs_pad:
        pad = padded_total - total
        x_flat = jnp.pad(x_flat, (0, pad))
        v_flat = jnp.pad(v_flat, (0, pad))

    x2 = x_flat.reshape(rows, _LANE)
    v2 = v_flat.reshape(rows, _LANE)

    # Tile rows: as large as the per-generation VMEM budget allows (amortizes
    # the ~0.35 us per-grid-step overhead), but capped so that the "parallel"
    # grid axis still has >= min_grid_steps blocks on v7x.
    max_tile_rows = max(sublane, (cfg["max_block_bytes"] // (_LANE * itemsize)) // 32 * 32)
    target_rows = _round_up(pl.cdiv(rows, cfg["min_grid_steps"]), sublane)
    tile_rows = min(max_tile_rows, target_rows)
    if tile_rows >= rows:
        tile_rows = rows  # single block == full array dims (always legal)
    grid = (pl.cdiv(rows, tile_rows),)  # ragged last block handled by Pallas

    block = pl.BlockSpec((tile_rows, _LANE), lambda i: (i, 0))

    kernel = functools.partial(
        _lif_kernel,
        threshold=float(threshold),
        decay=float(decay),
        reset_voltage=float(reset_voltage),
    )

    spikes2, v_new2 = pl.pallas_call(
        kernel,
        out_shape=(
            jax.ShapeDtypeStruct((rows, _LANE), dtype),
            jax.ShapeDtypeStruct((rows, _LANE), dtype),
        ),
        grid=grid,
        in_specs=[block, block],
        out_specs=(block, block),
        # NOTE: no input_output_aliases — membrane_potential is not donated, so
        # an alias would trigger a defensive copy (extra HBM read+write).
        compiler_params=pltpu.CompilerParams(
            dimension_semantics=("parallel",),
            vmem_limit_bytes=cfg["vmem_limit_bytes"],
        ),
    )(x2, v2)

    if needs_pad:
        spikes = spikes2.reshape(-1)[:total].reshape(orig_shape)
        v_new = v_new2.reshape(-1)[:total].reshape(orig_shape)
    else:
        spikes = spikes2.reshape(orig_shape)
        v_new = v_new2.reshape(orig_shape)
    return spikes, v_new


def _lif_reference(x, v, threshold=1.0, decay=0.9, reset_voltage=0.0):
    v = decay * v + x
    spikes = (v >= threshold).astype(v.dtype)
    v = jnp.where(spikes > 0, jnp.full_like(v, reset_voltage), v)
    return spikes, v


if __name__ == "__main__":
    key = jax.random.PRNGKey(0)
    kx, kv = jax.random.split(key)

    # Small NCHW inputs: batch=2, channels=4, spatial=16x16.
    x = jax.random.normal(kx, (2, 4, 16, 16), dtype=jnp.float32) * 1.5
    membrane = jax.random.normal(kv, (2, 4, 16, 16), dtype=jnp.float32) * 0.5

    ref_spikes, ref_v = _lif_reference(x, membrane, 1.0, 0.9, 0.0)

    spikes, v_new = lif_neuron_forward(
        x, membrane, threshold=1.0, decay=0.9, reset_voltage=0.0
    )
    jax.block_until_ready((spikes, v_new))

    assert spikes.shape == x.shape and v_new.shape == x.shape

    # Tolerant check: an element whose membrane lands exactly at threshold can
    # flip between fused-FMA and non-fused evaluations of decay*v + x, so
    # require >= 99.9% spike agreement and close membranes where spikes agree.
    agree = spikes == ref_spikes
    assert float(jnp.mean(agree.astype(jnp.float32))) > 0.999, "spikes mismatch"
    assert bool(
        jnp.allclose(jnp.where(agree, v_new, ref_v), ref_v, atol=1e-5)
    ), "membrane mismatch"

    print("KERNEL_OK")
</pallas_src>

<mosaic_0001>
module attributes {stable_mosaic.version = 11 : i64} {
  func.func @_lif_kernel(%arg0: i32, %arg1: memref<8x128xf32, #tpu.memory_space<vmem>>, %arg2: memref<8x128xf32, #tpu.memory_space<vmem>>, %arg3: memref<8x128xf32, #tpu.memory_space<vmem>>, %arg4: memref<8x128xf32, #tpu.memory_space<vmem>>) attributes {dimension_semantics = [#tpu.dimension_semantics<parallel>], iteration_bounds = array<i64: 2>, scalar_prefetch = 0 : i64, scratch_operands = 0 : i64, tpu.core_type = #tpu.core_type<tc>, window_params = [{transform_indices = @transform_0, window_bounds = array<i64: 8, 128>}, {transform_indices = @transform_1, window_bounds = array<i64: 8, 128>}, {transform_indices = @transform_2, window_bounds = array<i64: 8, 128>}, {transform_indices = @transform_3, window_bounds = array<i64: 8, 128>}]} {
    %c0 = arith.constant 0 : index
    %c0_0 = arith.constant 0 : index
    %0 = vector.load %arg2[%c0, %c0_0] : memref<8x128xf32, #tpu.memory_space<vmem>>, vector<8x128xf32>
    %cst = arith.constant 0.899999976 : f32
    %1 = vector.broadcast %cst : f32 to vector<8x128xf32>
    %2 = arith.mulf %1, %0 : vector<8x128xf32>
    %c0_1 = arith.constant 0 : index
    %c0_2 = arith.constant 0 : index
    %3 = vector.load %arg1[%c0_1, %c0_2] : memref<8x128xf32, #tpu.memory_space<vmem>>, vector<8x128xf32>
    %4 = arith.addf %2, %3 : vector<8x128xf32>
    %cst_3 = arith.constant 1.000000e+00 : f32
    %5 = vector.broadcast %cst_3 : f32 to vector<8x128xf32>
    %6 = arith.cmpf oge, %4, %5 : vector<8x128xf32>
    %7 = arith.extui %6 : vector<8x128xi1> to vector<8x128xi32>
    %8 = arith.sitofp %7 : vector<8x128xi32> to vector<8x128xf32>
    %c0_4 = arith.constant 0 : index
    %c0_5 = arith.constant 0 : index
    %9 = vector.load %arg3[%c0_4, %c0_5] : memref<8x128xf32, #tpu.memory_space<vmem>>, vector<8x128xf32>
    tpu.vector_store %arg3[%c0_4, %c0_5], %8 {strides = array<i32>} : memref<8x128xf32, #tpu.memory_space<vmem>>, vector<8x128xf32>,
    %cst_6 = arith.constant 0.000000e+00 : f32
    %10 = vector.broadcast %cst_6 : f32 to vector<8x128xf32>
    %11 = arith.select %6, %10, %4 : vector<8x128xi1>, vector<8x128xf32>
    %c0_7 = arith.constant 0 : index
    %c0_8 = arith.constant 0 : index
    %12 = vector.load %arg4[%c0_7, %c0_8] : memref<8x128xf32, #tpu.memory_space<vmem>>, vector<8x128xf32>
    tpu.vector_store %arg4[%c0_7, %c0_8], %11 {strides = array<i32>} : memref<8x128xf32, #tpu.memory_space<vmem>>, vector<8x128xf32>,
    return
  }
  func.func @transform_0(%arg0: i32) -> (i32, i32) {
    %c0_i32 = arith.constant 0 : i32
    %c0_i32_0 = arith.constant 0 : i32
    return %arg0, %c0_i32 : i32, i32
  }
  func.func @transform_1(%arg0: i32) -> (i32, i32) {
    %c0_i32 = arith.constant 0 : i32
    %c0_i32_0 = arith.constant 0 : i32
    return %arg0, %c0_i32 : i32, i32
  }
  func.func @transform_2(%arg0: i32) -> (i32, i32) {
    %c0_i32 = arith.constant 0 : i32
    %c0_i32_0 = arith.constant 0 : i32
    return %arg0, %c0_i32 : i32, i32
  }
  func.func @transform_3(%arg0: i32) -> (i32, i32) {
    %c0_i32 = arith.constant 0 : i32
    %c0_i32_0 = arith.constant 0 : i32
    return %arg0, %c0_i32 : i32, i32
  }
}

</mosaic_0001>

<bundles_post_ra>
// kernel: lif_neuron_forward.1
= control target key start
LH: loop header
LB: loop body
LE: loop exit
PB: predicated region body
PF: predicated region fallthrough
CT: control target
= control target key end

     0   :  { %s350_s12 = smov 0   ;;  %s367_s0 = inlined_call_operand.vmem [shape: f32[16,128], index: 0, kind: input, shape index: {}]   ;;  %s368_s1 = inlined_call_operand.vmem [shape: f32[16,128], index: 1, kind: input, shape index: {}]   ;;  %s369_s2 = inlined_call_operand.vmem [shape: f32[16,128], index: 2, kind: output, shape index: {0}]   ;;  %s370_s3 = inlined_call_operand.vmem [shape: f32[16,128], index: 3, kind: output, shape index: {1}]  }
   0x1 LB: > { %s300_s13 = sadd.s32 4294967295, %s327_s12   ;;  %p304_p0 = scmp.ge.s32.totalorder %s327_s12, 1  ;;  %s327_s12 = sphi %s350_s12, %s14_s12  }
   0x2   : > { %p148_p1 = scmp.lt.s32.totalorder %s327_s12, 3 }
   0x4   : > { %p149_p2 = pnand %p304_p0, %p148_p1 }
   0x5   : > { %p178_p3 = scmp.lt.s32.totalorder (!%p149_p2), %s300_s13, 1  ;;  %v329_v4 = vmov (!%p149_p2), 0.0  }
   0x6   : > { %152 = sbr.rel (%p149_p2) target bundleno = 24 (0x18), region = 28 }
   0xd   : > { %s372_s13 = smov (!%p178_p3, %s300_s13), 1 }
   0xe   : > { %s305_s14 = sshll.u32 %s372_s13, 3 }
   0xf   : > { %s181_s17 = scalar_lea.vmem %s367_s0, %s305_s14  ;;  %s185_s20 = scalar_lea.vmem %s368_s1, %s305_s14 }
  0x10   : > { %v194_v0 = vld [vmem:[%s185_s20] sm:$0xff]  ;;  %s189_s23 = scalar_lea.vmem %s369_s2, %s305_s14  ;;  %s193_s26 = scalar_lea.vmem %s370_s3, %s305_s14 }
  0x11   : > { %v196_v1 = vld [vmem:[%s181_s17] sm:$0xff]  ;;  %v195_v2 = vmul.f32 0.9, %v194_v0 }
  0x13   : > { %v197_v3 = vadd.f32 %v196_v1, %v195_v2 }
  0x15   : > { %vm198_vm0 = vcmp.ge.f32.partialorder %v197_v3, 1.0 }
  0x16   : > { %v309_v5 = vsel %vm198_vm0, 1.0, %v329_v4  ;;  %v202_v6 = vsel %vm198_vm0, 0.0, %v197_v3 }
  0x17   : > { %201 = vst [vmem:[%s189_s23] sm:$0xff] %v309_v5  ;;  %203 = vst [vmem:[%s193_s26] sm:$0xff] %v202_v6 }
  0x18 PF: > { %s14_s12 = sadd.s32 1, %s327_s12  }
  0x19   : > { %p11_p4 = scmp.ge.s32.totalorder %s14_s12, 4  }
  0x1b   :  { %13 = sbr.rel (!%p11_p4) target bundleno = 1 (0x1), region = 73 }

</bundles_post_ra>
